<compile_context>
chip_gen: v5e
topology: v5e:2x2
jax: 0.10.0
libtpu: 0.0.40
codegen_flags: <defaults>
</compile_context>

<pallas_src>
import functools

import jax
import jax.numpy as jnp
from jax.experimental import pallas as pl
from jax.experimental.pallas import tpu as pltpu


_SUBLANE_I8 = 32                        # int8 native sublane tile height
_RS_BUFFER_BYTES = 12 * 1024 * 1024     # per riskset input buffer (x2 double-buffered)
_VMEM_LIMIT_BYTES = 48 * 1024 * 1024    # fits v7x's 64 MiB physical VMEM with headroom


def _choose_tile_rows(n, tm_max):
    """Row-tile height for the (tm, n) int8 riskset stream.

    - tm * n (int8) stays within _RS_BUFFER_BYTES so the double-buffered pair
      plus the small per-row vectors fit the explicit vmem limit on every chip.
    - tm is a multiple of 32 (int8 sublane tiling) unless it covers all rows.
    - keep >= 4 grid steps when n is large enough so the "parallel" grid axis
      has work to split across v7x's two TensorCores.
    """
    cap = min(_RS_BUFFER_BYTES // max(n, 1), max(int(tm_max), 1))
    if n >= 4 * _SUBLANE_I8:
        cap = min(cap, -(-n // 4))                 # aim for >= 4 tiles
    cap = max(_SUBLANE_I8, (cap // _SUBLANE_I8) * _SUBLANE_I8)
    return n if cap >= n else cap


def _amax_kernel(o_row_ref, rs_ref, amax_ref):
    """amax[i] = max_j(outputs[j] * riskset[i, j]) for one row tile."""
    rs = rs_ref[...].astype(jnp.float32)            # 0/1 widened in-VMEM (1-byte DMA)
    masked = o_row_ref[...] * rs                    # outputs broadcast over rows
    amax_ref[...] = jnp.max(masked, axis=1, keepdims=True)   # (tm, 1)
    # Overrun rows of the ragged last tile produce garbage here; their writes
    # fall outside the (n, 1) output and are dropped by Pallas.


def _loss_kernel(e_row_ref, amax_ref, ev_ref, o_ref, rs_ref, part_ref, *, n, tm):
    """Tile partial of sum_i ev[i] * (amax[i] + log(sum_j rs[i,j]*e[j]) - o[i])."""
    rs = rs_ref[...].astype(jnp.float32)                              # (tm, n)
    exp_sum = jnp.sum(rs * e_row_ref[...], axis=1, keepdims=True)     # (tm, 1)
    # NOTE: a real row with an empty risk set gives log(0) = -inf and, if its
    # event is 0, 0 * -inf = NaN -- identical to the PyTorch module (not guarded).
    log_cumsum = amax_ref[...] + jnp.log(exp_sum)                     # (tm, 1)
    contrib = ev_ref[...] * (log_cumsum - o_ref[...])                 # (tm, 1)
    if (-(-n // tm)) * tm != n:
        # The last tile overruns the (unpadded) arrays: zero its out-of-range rows
        # (the where also scrubs any NaN/garbage produced from the overrun reads).
        row = pl.program_id(0) * tm + jax.lax.broadcasted_iota(
            jnp.int32, contrib.shape, 0)
        contrib = jnp.where(row < n, contrib, 0.0)
    part_ref[...] = jnp.sum(contrib, axis=0, keepdims=True)           # (1, 1)


def coxph_loss(outputs, events, riskset, *, tm_max=1024):
    """Pallas implementation of CoxPH_Loss.forward(outputs, (events, riskset))."""
    n = int(outputs.shape[0])
    o = outputs.astype(jnp.float32).reshape(n)
    ev = events.astype(jnp.float32).reshape(n)

    # Stream the 0/1 risk-set indicators at 1 byte/element regardless of the
    # incoming dtype (bool / int / float); the kernels widen in-VMEM.
    rs = riskset if riskset.dtype == jnp.int8 else (riskset != 0).astype(jnp.int8)

    tm = _choose_tile_rows(n, tm_max)
    num_tiles = -(-n // tm)              # ragged last tile handled in-kernel

    o_row = o.reshape(1, n)
    o_col = o.reshape(n, 1)
    ev_col = ev.reshape(n, 1)

    cparams = pltpu.CompilerParams(
        dimension_semantics=("parallel",),     # megacore can split the row tiles
        vmem_limit_bytes=_VMEM_LIMIT_BYTES,    # v5e scoped default (16 MiB) is too small
    )

    # --- Pass 1: amax[i] = max_j(outputs[j] * riskset[i, j]) ------------------
    amax_col = pl.pallas_call(
        _amax_kernel,
        grid=(num_tiles,),
        in_specs=[
            pl.BlockSpec((1, n), lambda i: (0, 0)),     # outputs, lane-row layout
            pl.BlockSpec((tm, n), lambda i: (i, 0)),    # riskset row tile, int8
        ],
        out_specs=pl.BlockSpec((tm, 1), lambda i: (i, 0)),
        out_shape=jax.ShapeDtypeStruct((n, 1), jnp.float32),
        compiler_params=cparams,
        cost_estimate=pl.CostEstimate(
            flops=3 * n * n, transcendentals=0, bytes_accessed=n * n + 8 * n),
    )(o_row, rs)

    # e[j] = exp(outputs[j] - amax[j]): O(N) work + the (N,1)->(1,N) relayout stay
    # in plain XLA between the passes (cheaper than a lane-transpose in-kernel).
    e_row = jnp.exp(o - amax_col.reshape(n)).reshape(1, n)

    # --- Pass 2: per-tile partial sums of ev * (log_cumsum_h - outputs) --------
    partials = pl.pallas_call(
        functools.partial(_loss_kernel, n=n, tm=tm),
        grid=(num_tiles,),
        in_specs=[
            pl.BlockSpec((1, n), lambda i: (0, 0)),     # e, lane-row layout
            pl.BlockSpec((tm, 1), lambda i: (i, 0)),    # amax tile
            pl.BlockSpec((tm, 1), lambda i: (i, 0)),    # events tile
            pl.BlockSpec((tm, 1), lambda i: (i, 0)),    # outputs tile
            pl.BlockSpec((tm, n), lambda i: (i, 0)),    # riskset row tile, int8
        ],
        out_specs=pl.BlockSpec((None, 1, 1), lambda i: (i, 0, 0)),
        out_shape=jax.ShapeDtypeStruct((num_tiles, 1, 1), jnp.float32),
        compiler_params=cparams,
        cost_estimate=pl.CostEstimate(
            flops=3 * n * n, transcendentals=n, bytes_accessed=n * n + 20 * n),
    )(e_row, amax_col, ev_col, o_col, rs)

    # Final reduce over the per-tile partials; divide by the GLOBAL example count.
    return jnp.sum(partials) / jnp.float32(n)


def coxph_loss_reference(outputs, events, riskset):
    """Pure-JAX reference mirroring the PyTorch code literally (O(N^2) exp)."""
    o = outputs.astype(jnp.float32).reshape(-1)
    ev = events.astype(jnp.float32)
    rs = riskset.astype(jnp.float32)
    masked = o[None, :] * rs
    amax = jnp.max(masked, axis=1)
    shift = masked - amax[None, :]          # torch broadcast over the LAST axis
    exp_masked = jnp.exp(shift) * rs
    exp_sum = jnp.sum(exp_masked, axis=1)
    log_cumsum = amax + jnp.log(exp_sum)
    return jnp.sum(ev * (log_cumsum - o)) / outputs.shape[0]


if __name__ == "__main__":
    key = jax.random.PRNGKey(0)
    k1, k2, k3, k4, k5 = jax.random.split(key, 5)

    # --- small case: batch of 8 risk scores, lower-triangular risk sets -------
    N = 8
    outputs = jax.random.normal(k1, (N, 1), dtype=jnp.float32)
    events = jax.random.bernoulli(k2, 0.6, (N,))                  # bool, like torch
    riskset = jnp.tril(jnp.ones((N, N), dtype=jnp.float32))       # 0/1 indicators

    out = jax.block_until_ready(coxph_loss(outputs, events, riskset))
    ref = coxph_loss_reference(outputs, events, riskset)
    assert jnp.allclose(out, ref, rtol=1e-5, atol=1e-5), (out, ref)

    # --- multi-tile + ragged-edge path (N not a multiple of the 32-row tile) ---
    N2 = 70
    outputs2 = jax.random.normal(k3, (N2, 1), dtype=jnp.float32)
    events2 = jax.random.bernoulli(k4, 0.5, (N2,))
    riskset2 = jnp.maximum(
        jax.random.bernoulli(k5, 0.5, (N2, N2)).astype(jnp.float32),
        jnp.eye(N2, dtype=jnp.float32))                           # non-empty risk sets
    out2 = jax.block_until_ready(coxph_loss(outputs2, events2, riskset2, tm_max=32))
    ref2 = coxph_loss_reference(outputs2, events2, riskset2)
    assert jnp.allclose(out2, ref2, rtol=1e-5, atol=1e-5), (out2, ref2)

    print("KERNEL_OK")
</pallas_src>

<mosaic_0001>
module attributes {stable_mosaic.version = 11 : i64} {
  func.func @_amax_kernel(%arg0: i32, %arg1: memref<1x8xf32, #tpu.memory_space<vmem>>, %arg2: memref<8x8xi8, #tpu.memory_space<vmem>>, %arg3: memref<8x1xf32, #tpu.memory_space<vmem>>) attributes {dimension_semantics = [#tpu.dimension_semantics<parallel>], iteration_bounds = array<i64: 1>, scalar_prefetch = 0 : i64, scratch_operands = 0 : i64, tpu.core_type = #tpu.core_type<tc>, window_params = [{pipeline_mode = #tpu.pipeline_mode<synchronous>, transform_indices = @transform_0, window_bounds = array<i64: 1, 8>}, {transform_indices = @transform_1, window_bounds = array<i64: 8, 8>}, {transform_indices = @transform_2, window_bounds = array<i64: 8, 1>}]} {
    %c0 = arith.constant 0 : index
    %c0_0 = arith.constant 0 : index
    %0 = vector.load %arg2[%c0, %c0_0] : memref<8x8xi8, #tpu.memory_space<vmem>>, vector<8x8xi8>
    %1 = arith.sitofp %0 : vector<8x8xi8> to vector<8x8xf32>
    %c0_1 = arith.constant 0 : index
    %c0_2 = arith.constant 0 : index
    %2 = vector.load %arg1[%c0_1, %c0_2] : memref<1x8xf32, #tpu.memory_space<vmem>>, vector<1x8xf32>
    %3 = vector.broadcast %2 : vector<1x8xf32> to vector<8x8xf32>
    %4 = arith.mulf %3, %1 : vector<8x8xf32>
    %cst = arith.constant dense<0xFF800000> : vector<8xf32>
    %5 = vector.multi_reduction <maximumf>, %4, %cst [1] : vector<8x8xf32> to vector<8xf32>
    %6 = vector.shape_cast %5 : vector<8xf32> to vector<8x1xf32>
    %c0_3 = arith.constant 0 : index
    %c0_4 = arith.constant 0 : index
    %7 = vector.load %arg3[%c0_3, %c0_4] : memref<8x1xf32, #tpu.memory_space<vmem>>, vector<8x1xf32>
    tpu.vector_store %arg3[%c0_3, %c0_4], %6 {strides = array<i32>} : memref<8x1xf32, #tpu.memory_space<vmem>>, vector<8x1xf32>,
    return
  }
  func.func @transform_0(%arg0: i32) -> (i32, i32) {
    %c0_i32 = arith.constant 0 : i32
    %c0_i32_0 = arith.constant 0 : i32
    %c0_i32_1 = arith.constant 0 : i32
    return %c0_i32, %c0_i32_0 : i32, i32
  }
  func.func @transform_1(%arg0: i32) -> (i32, i32) {
    %c0_i32 = arith.constant 0 : i32
    %c0_i32_0 = arith.constant 0 : i32
    return %arg0, %c0_i32 : i32, i32
  }
  func.func @transform_2(%arg0: i32) -> (i32, i32) {
    %c0_i32 = arith.constant 0 : i32
    %c0_i32_0 = arith.constant 0 : i32
    return %arg0, %c0_i32 : i32, i32
  }
}

</mosaic_0001>

<bundles_post_ra>
// kernel: tpu_custom_call.1
= control target key start
LH: loop header
LB: loop body
LE: loop exit
PB: predicated region body
PF: predicated region fallthrough
CT: control target
= control target key end

     0   :  { %7 = vsyncpa [#allocation3], 0  ;;  %s140_s0 = inlined_call_operand.hbm [shape: f32[1,8], index: 0, kind: input, shape index: {}]   ;;  %s141_s1 = inlined_call_operand.hbm [shape: s8[8,8], index: 1, kind: input, shape index: {}]   ;;  %s142_s2 = inlined_call_operand.vmem [shape: f32[8,1], index: 2, kind: output, shape index: {}]  }
   0x1   :  { %s14_s11 = sshll.u32 %s140_s0, 4  ;;  %s15_s11 = int_to_ptr.hbm [resolvable:$true] %s14_s11 }
   0x2   :  { %8 = vsyncpa [#allocation5], 0  ;;  %s114_s12 = smov [#allocation2]   ;;  %s25_s16 = sshll.u32 %s141_s1, 4  ;;  %s26_s16 = int_to_ptr.hbm [resolvable:$true] %s25_s16 }
   0x3   :  { %s16_s13 = sshll.u32 %s114_s12, 4  ;;  %s115_s17 = smov [#allocation4]   ;;  %s17_s13 = int_to_ptr.vmem [resolvable:$true] %s16_s13 }
   0x4   :  { %19 = dma.hbm_to_vmem [thread:$0]  %s15_s11, 16, %s17_s13, [#allocation3]  }
   0x5   :  { %s27_s18 = sshll.u32 %s115_s17, 4  ;;  %s28_s18 = int_to_ptr.vmem [resolvable:$true] %s27_s18 }
   0x6   :  { %30 = dma.hbm_to_vmem [thread:$0]  %s26_s16, 32, %s28_s18, [#allocation5]  }
   0x7   :  { %110 = dma.done.wait [#allocation3], 16  }
   0x8   :  { %111 = vsyncadd [#allocation3], 4294967280 }
   0x9   :  { %112 = dma.done.wait [#allocation5], 32  }
   0xa   :  { %113 = vsyncadd [#allocation5], 4294967264  ;;  %v39_v0 = vld [vmem:[#allocation4] sm:$0x3]  ;;  %v61_v2 = vld [vmem:[#allocation2] ss:$0 sm:$0xff] }
   0xb   :  { %v40_v1 = vunpack.c.0.s8 %v39_v0  ;;  %vm47_vm0 = vcmask 64512   ;;  %vm51_vm1 = vcmask 7168  }
   0xd   :  { %v41_v3 = vcvt.s32.f32 %v40_v1 }
   0xf   :  { %v46_v4 = vmul.f32 %v61_v2, %v41_v3 }
  0x11   :  { %v48_v5 = vsel %vm47_vm0, %v46_v4, -inf }
  0x12   :  { %49 = vmax.xlane.f32.xlu0 %v48_v5 }
  0x85   :  { %v50_v6 = vpop.xlane.xlu0 %49 }
  0x86   :  { %52 = vst.msk [vmem:[%s142_s2] sm:$0xff] %vm51_vm1, %v50_v6 }
  0x87   :  { %57 = vsyncpa [#allocation3], 1 }
  0x88   :  { %58 = vsyncpa [#allocation5], 1 }

</bundles_post_ra>
